<compile_context>
chip_gen: v6e
topology: v6e:2x2x1
jax: 0.10.0
libtpu: 0.0.40
codegen_flags: <defaults>
</compile_context>

<pallas_src>
import jax
import jax.numpy as jnp
from jax.experimental import pallas as pl
from jax.experimental.pallas import tpu as pltpu

B, S, D = 2, 8, 32          # batch, sequence, input_dim
BS = B * S                  # fused token axis
KD = D                      # key_dim (== input_dim, see note above)
H = 4                       # n_head
HD = D // H                 # head_dim
MLP = 64                    # mlp_dim
EPS = 1e-5                  # nn.LayerNorm default eps
LANES = 128                 # lane-aligned slab width

# Row offsets inside the packed bf16 weight slab (shape (3D + MLP, 128)).
RW_COMB = 0                 # (D, 3D->128)  composed x -> [Q|K|V] (Q pre-scaled)
RW_OUT = D                  # (D, D->128)   out_proj.weight.T
RW_MLP1 = 2 * D             # (D, MLP->128) mlp[0].weight.T
RW_MLP2 = 3 * D             # (MLP, D->128) mlp[2].weight.T
W_ROWS = 3 * D + MLP

# Row indices inside the packed f32 bias slab (shape (8, 128)).
B_QKV, B_OUT, B_G1, B_BE1, B_G2, B_BE2, B_MLP1, B_MLP2 = range(8)


def _layernorm(x, gamma, beta):
    mu = jnp.mean(x, axis=-1, keepdims=True)
    var = jnp.mean((x - mu) ** 2, axis=-1, keepdims=True)
    return (x - mu) * jax.lax.rsqrt(var + EPS) * gamma + beta


def self_attention_kernel(x_ref, w_ref, b_ref, c_ref, o_ref):
    x = x_ref[...]                                   # (BS, D) f32
    head_mask = c_ref[:, 0:D]                        # (H*BS, D) 0/1 head-column mask
    attn_bias = c_ref[:, D:D + BS]                   # (H*BS, BS) cross-batch additive mask

    # One composed projection x -> [Q | K | V | pad]; Q columns already scaled.
    qkv = jnp.dot(x.astype(jnp.bfloat16), w_ref[RW_COMB:RW_COMB + D, :],
                  preferred_element_type=jnp.float32) + b_ref[B_QKV:B_QKV + 1, :]
    Q = qkv[:, 0:D]
    K = qkv[:, D:2 * D]
    V = qkv[:, 2 * D:3 * D]

    # Batch heads along sublanes: row block h keeps only head-h columns of Q, so one
    # (64,32)x(32,16) matmul computes every head's QK^T.
    Qs = (jnp.concatenate([Q] * H, axis=0) * head_mask).astype(jnp.bfloat16)
    s = jax.lax.dot_general(Qs, K.astype(jnp.bfloat16), (((1,), (1,)), ((), ())),
                            preferred_element_type=jnp.float32) + attn_bias
    s = s - jnp.max(s, axis=-1, keepdims=True)
    p = jnp.exp(s)
    p = p * pl.reciprocal(jnp.sum(p, axis=-1, keepdims=True), approx=True)
    # TODO(synk): attention dropout (p=0.1) omitted — eval-mode semantics.

    # One (64,16)x(16,32) PV matmul; row block h is valid only on head-h columns, so
    # mask and fold the 4 sublane blocks back to (BS, D) — all in vregs.
    o = jnp.dot(p.astype(jnp.bfloat16), V.astype(jnp.bfloat16),
                preferred_element_type=jnp.float32) * head_mask
    attn = o[0:BS] + o[BS:2 * BS] + o[2 * BS:3 * BS] + o[3 * BS:4 * BS]   # (BS, D)

    # MHA out_proj
    y = jnp.dot(attn.astype(jnp.bfloat16), w_ref[RW_OUT:RW_OUT + D, 0:D],
                preferred_element_type=jnp.float32) + b_ref[B_OUT:B_OUT + 1, 0:D]

    # Residual + norm1
    h1 = _layernorm(x + y, b_ref[B_G1:B_G1 + 1, 0:D], b_ref[B_BE1:B_BE1 + 1, 0:D])

    # MLP: Linear -> ReLU -> Linear
    m = jnp.maximum(
        jnp.dot(h1.astype(jnp.bfloat16), w_ref[RW_MLP1:RW_MLP1 + D, 0:MLP],
                preferred_element_type=jnp.float32) + b_ref[B_MLP1:B_MLP1 + 1, 0:MLP],
        0.0)
    m = jnp.dot(m.astype(jnp.bfloat16), w_ref[RW_MLP2:RW_MLP2 + MLP, 0:D],
                preferred_element_type=jnp.float32) + b_ref[B_MLP2:B_MLP2 + 1, 0:D]

    # Residual + norm2
    o_ref[...] = _layernorm(h1 + m, b_ref[B_G2:B_G2 + 1, 0:D],
                            b_ref[B_BE2:B_BE2 + 1, 0:D])


def _padc(a, cols=LANES):
    return jnp.pad(a, ((0, 0), (0, cols - a.shape[1])))


def pack_params(params):
    """Host-side packing (called ONCE, outside jit): compose the outer Wq/Wk/Wv with the
    MHA in_proj, pre-transpose everything, fold the 1/sqrt(HD) scale into the Q columns,
    pad to 128 lanes and emit three slabs: bf16 weights, f32 biases, f32 constants."""
    (wq, bq, wk, bk, wv, bv, in_w, in_b, out_w, out_b,
     g1, be1, g2, be2, w1, bb1, w2, bb2) = params

    Winq, Wink, Winv = in_w[0:D], in_w[D:2 * D], in_w[2 * D:3 * D]
    binq, bink, binv = in_b[:, 0:D], in_b[:, D:2 * D], in_b[:, 2 * D:3 * D]
    scale = 1.0 / (HD ** 0.5)

    # query = Wk(x), key = Wq(x), value = Wv(x)  (module calls attention(k, q, v)).
    Wc_q = (wk.T @ Winq.T) * scale
    Wc_k = wq.T @ Wink.T
    Wc_v = wv.T @ Winv.T
    bc_q = (bk @ Winq.T + binq) * scale
    bc_k = bq @ Wink.T + bink
    bc_v = bv @ Winv.T + binv
    W_comb = jnp.concatenate([Wc_q, Wc_k, Wc_v], axis=1)    # (D, 3D)
    b_comb = jnp.concatenate([bc_q, bc_k, bc_v], axis=1)    # (1, 3D)

    wslab = jnp.concatenate([
        _padc(W_comb),            # rows 0      : D
        _padc(out_w.T),           # rows D      : 2D
        _padc(w1.T),              # rows 2D     : 3D
        _padc(w2.T),              # rows 3D     : 3D+MLP
    ], axis=0).astype(jnp.bfloat16)                         # (160, 128) bf16

    bias_rows = [b_comb, out_b, g1, be1, g2, be2, bb1, bb2]
    bslab = jnp.concatenate([_padc(r) for r in bias_rows],
                            axis=0).astype(jnp.float32)     # (8, 128) f32

    # Constant slab: head-column mask (cols 0:D) + stacked cross-batch additive mask
    # (cols D:D+BS). Both are compile-time constants of the problem shape.
    head_mask = ((jnp.arange(D)[None, :] // HD) ==
                 (jnp.arange(H * BS)[:, None] // BS)).astype(jnp.float32)   # (H*BS, D)
    tok = jnp.arange(BS) // S
    cb = jnp.where(tok[:, None] == tok[None, :], 0.0, -1e30).astype(jnp.float32)
    cb_stacked = jnp.tile(cb, (H, 1))                                        # (H*BS, BS)
    cslab = jnp.concatenate(
        [head_mask, cb_stacked,
         jnp.zeros((H * BS, LANES - D - BS), jnp.float32)], axis=1)          # (64, 128)

    return wslab, bslab, cslab


@jax.jit
def self_attention_forward(x, wslab, bslab, cslab):
    out2d = pl.pallas_call(
        self_attention_kernel,
        out_shape=jax.ShapeDtypeStruct((BS, D), jnp.float32),
    )(x.reshape(BS, D), wslab, bslab, cslab)
    return out2d.reshape(B, S, D)


def reference(x, params):
    (wq, bq, wk, bk, wv, bv, in_w, in_b, out_w, out_b,
     g1, be1, g2, be2, w1, bb1, w2, bb2) = params
    q = x @ wq.T + bq
    k = x @ wk.T + bk
    v = x @ wv.T + bv
    Q = k @ in_w[0:D].T + in_b[:, 0:D]
    K = q @ in_w[D:2 * D].T + in_b[:, D:2 * D]
    V = v @ in_w[2 * D:].T + in_b[:, 2 * D:]

    def split(t):
        return t.reshape(B, S, H, HD).transpose(0, 2, 1, 3)

    Qh, Kh, Vh = split(Q), split(K), split(V)
    s = jnp.einsum("bhqd,bhkd->bhqk", Qh, Kh) / jnp.sqrt(HD)
    p = jax.nn.softmax(s, axis=-1)
    o = jnp.einsum("bhqk,bhkd->bhqd", p, Vh).transpose(0, 2, 1, 3).reshape(B, S, D)
    y = o @ out_w.T + out_b

    def ln(t, g, be):
        mu = t.mean(-1, keepdims=True)
        var = ((t - mu) ** 2).mean(-1, keepdims=True)
        return (t - mu) / jnp.sqrt(var + EPS) * g + be

    h1 = ln(x + y, g1, be1)
    m = jax.nn.relu(h1 @ w1.T + bb1) @ w2.T + bb2
    return ln(h1 + m, g2, be2)


def make_params(key):
    ks = jax.random.split(key, 16)
    n = lambda k, shape: (jax.random.normal(k, shape, jnp.float32) * 0.1)
    wq, bq = n(ks[0], (D, D)), n(ks[1], (1, D))
    wk, bk = n(ks[2], (KD, D)), n(ks[3], (1, KD))
    wv, bv = n(ks[4], (D, D)), n(ks[5], (1, D))
    in_w, in_b = n(ks[6], (3 * D, D)), n(ks[7], (1, 3 * D))
    out_w, out_b = n(ks[8], (D, D)), n(ks[9], (1, D))
    g1, be1 = jnp.ones((1, D), jnp.float32), jnp.zeros((1, D), jnp.float32)
    g2, be2 = jnp.ones((1, D), jnp.float32), jnp.zeros((1, D), jnp.float32)
    w1, bb1 = n(ks[10], (MLP, D)), n(ks[11], (1, MLP))
    w2, bb2 = n(ks[12], (D, MLP)), n(ks[13], (1, D))
    return (wq, bq, wk, bk, wv, bv, in_w, in_b, out_w, out_b,
            g1, be1, g2, be2, w1, bb1, w2, bb2)


if __name__ == "__main__":
    key = jax.random.PRNGKey(0)
    kx, kp = jax.random.split(key)
    x = jax.random.normal(kx, (B, S, D), jnp.float32)
    params = make_params(kp)

    # Pack once at init (outside the jitted per-call path).
    wslab, bslab, cslab = pack_params(params)

    out = jax.block_until_ready(self_attention_forward(x, wslab, bslab, cslab))
    ref = jax.block_until_ready(reference(x, params))

    assert out.shape == (B, S, D)
    # Tolerance accounts for bf16 MXU operands (f32 accumulation) and the EUP
    # approximate reciprocal in the softmax denominator.
    assert jnp.allclose(out, ref, rtol=2e-2, atol=2e-2), "mismatch vs reference"
    print("KERNEL_OK")
</pallas_src>

<mosaic_0001>
module attributes {stable_mosaic.version = 11 : i64} {
  func.func @self_attention_kernel(%arg0: memref<16x32xf32, #tpu.memory_space<vmem>>, %arg1: memref<160x128xbf16, #tpu.memory_space<vmem>>, %arg2: memref<8x128xf32, #tpu.memory_space<vmem>>, %arg3: memref<64x128xf32, #tpu.memory_space<vmem>>, %arg4: memref<16x32xf32, #tpu.memory_space<vmem>>) attributes {dimension_semantics = [], scalar_prefetch = 0 : i64, scratch_operands = 0 : i64, tpu.core_type = #tpu.core_type<tc>} {
    %c0 = arith.constant 0 : index
    %c0_0 = arith.constant 0 : index
    %0 = vector.load %arg0[%c0, %c0_0] : memref<16x32xf32, #tpu.memory_space<vmem>>, vector<16x32xf32>
    %c0_1 = arith.constant 0 : index
    %c0_2 = arith.constant 0 : index
    %1 = vector.load %arg3[%c0_1, %c0_2] : memref<64x128xf32, #tpu.memory_space<vmem>>, vector<64x32xf32>
    %c0_3 = arith.constant 0 : index
    %c32 = arith.constant 32 : index
    %2 = vector.load %arg3[%c0_3, %c32] : memref<64x128xf32, #tpu.memory_space<vmem>>, vector<64x16xf32>
    %3 = arith.truncf %0 : vector<16x32xf32> to vector<16x32xbf16>
    %c0_4 = arith.constant 0 : index
    %c0_5 = arith.constant 0 : index
    %4 = vector.load %arg1[%c0_4, %c0_5] : memref<160x128xbf16, #tpu.memory_space<vmem>>, vector<32x128xbf16>
    %cst = arith.constant dense<0.000000e+00> : vector<16x128xf32>
    %5 = tpu.matmul %3, %4, %cst {dimension_numbers = #tpu.dot_dimension_numbers<[1], [0], [0], [1], [0, 0, 1, 1], [], []>} : vector<16x32xbf16>, vector<32x128xbf16>, vector<16x128xf32> -> vector<16x128xf32>
    %c0_6 = arith.constant 0 : index
    %c0_7 = arith.constant 0 : index
    %6 = vector.load %arg2[%c0_6, %c0_7] : memref<8x128xf32, #tpu.memory_space<vmem>>, vector<1x128xf32>
    %7 = vector.broadcast %6 : vector<1x128xf32> to vector<16x128xf32>
    %8 = arith.addf %5, %7 : vector<16x128xf32>
    %9 = vector.extract_strided_slice %8 {offsets = [0, 0], sizes = [16, 32], strides = [1, 1]} : vector<16x128xf32> to vector<16x32xf32>
    %10 = vector.extract_strided_slice %8 {offsets = [0, 32], sizes = [16, 32], strides = [1, 1]} : vector<16x128xf32> to vector<16x32xf32>
    %11 = vector.extract_strided_slice %8 {offsets = [0, 64], sizes = [16, 32], strides = [1, 1]} : vector<16x128xf32> to vector<16x32xf32>
    %12 = tpu.concatenate %9, %9, %9, %9 in 0 : vector<16x32xf32>, vector<16x32xf32>, vector<16x32xf32>, vector<16x32xf32> -> vector<64x32xf32>
    %13 = arith.mulf %12, %1 : vector<64x32xf32>
    %14 = arith.truncf %13 : vector<64x32xf32> to vector<64x32xbf16>
    %15 = arith.truncf %10 : vector<16x32xf32> to vector<16x32xbf16>
    %cst_8 = arith.constant dense<0.000000e+00> : vector<64x16xf32>
    %16 = tpu.matmul %14, %15, %cst_8 {dimension_numbers = #tpu.dot_dimension_numbers<[1], [1], [0], [0], [0, 0, 1, 0], [], []>} : vector<64x32xbf16>, vector<16x32xbf16>, vector<64x16xf32> -> vector<64x16xf32>
    %17 = arith.addf %16, %2 : vector<64x16xf32>
    %cst_9 = arith.constant dense<0xFF800000> : vector<64xf32>
    %18 = vector.multi_reduction <maximumf>, %17, %cst_9 [1] : vector<64x16xf32> to vector<64xf32>
    %19 = vector.shape_cast %18 : vector<64xf32> to vector<64x1xf32>
    %20 = vector.broadcast %19 : vector<64x1xf32> to vector<64x16xf32>
    %21 = arith.subf %17, %20 : vector<64x16xf32>
    %22 = math.exp %21 : vector<64x16xf32>
    %cst_10 = arith.constant dense<0.000000e+00> : vector<64xf32>
    %23 = vector.multi_reduction <add>, %22, %cst_10 [1] : vector<64x16xf32> to vector<64xf32>
    %24 = vector.shape_cast %23 : vector<64xf32> to vector<64x1xf32>
    %25 = tpu.reciprocal %24 {approx = true} : vector<64x1xf32> -> vector<64x1xf32>
    %26 = vector.broadcast %25 : vector<64x1xf32> to vector<64x16xf32>
    %27 = arith.mulf %22, %26 : vector<64x16xf32>
    %28 = arith.truncf %27 : vector<64x16xf32> to vector<64x16xbf16>
    %29 = arith.truncf %11 : vector<16x32xf32> to vector<16x32xbf16>
    %cst_11 = arith.constant dense<0.000000e+00> : vector<64x32xf32>
    %30 = tpu.matmul %28, %29, %cst_11 {dimension_numbers = #tpu.dot_dimension_numbers<[1], [0], [0], [1], [0, 0, 1, 1], [], []>} : vector<64x16xbf16>, vector<16x32xbf16>, vector<64x32xf32> -> vector<64x32xf32>
    %31 = arith.mulf %30, %1 : vector<64x32xf32>
    %32 = vector.extract_strided_slice %31 {offsets = [0, 0], sizes = [16, 32], strides = [1, 1]} : vector<64x32xf32> to vector<16x32xf32>
    %33 = vector.extract_strided_slice %31 {offsets = [16, 0], sizes = [16, 32], strides = [1, 1]} : vector<64x32xf32> to vector<16x32xf32>
    %34 = arith.addf %32, %33 : vector<16x32xf32>
    %35 = vector.extract_strided_slice %31 {offsets = [32, 0], sizes = [16, 32], strides = [1, 1]} : vector<64x32xf32> to vector<16x32xf32>
    %36 = arith.addf %34, %35 : vector<16x32xf32>
    %37 = vector.extract_strided_slice %31 {offsets = [48, 0], sizes = [16, 32], strides = [1, 1]} : vector<64x32xf32> to vector<16x32xf32>
    %38 = arith.addf %36, %37 : vector<16x32xf32>
    %39 = arith.truncf %38 : vector<16x32xf32> to vector<16x32xbf16>
    %c32_12 = arith.constant 32 : index
    %c0_13 = arith.constant 0 : index
    %40 = vector.load %arg1[%c32_12, %c0_13] : memref<160x128xbf16, #tpu.memory_space<vmem>>, vector<32x32xbf16>
    %cst_14 = arith.constant dense<0.000000e+00> : vector<16x32xf32>
    %41 = tpu.matmul %39, %40, %cst_14 {dimension_numbers = #tpu.dot_dimension_numbers<[1], [0], [0], [1], [0, 0, 1, 1], [], []>} : vector<16x32xbf16>, vector<32x32xbf16>, vector<16x32xf32> -> vector<16x32xf32>
    %c1 = arith.constant 1 : index
    %c0_15 = arith.constant 0 : index
    %42 = vector.load %arg2[%c1, %c0_15] : memref<8x128xf32, #tpu.memory_space<vmem>>, vector<1x32xf32>
    %43 = vector.broadcast %42 : vector<1x32xf32> to vector<16x32xf32>
    %44 = arith.addf %41, %43 : vector<16x32xf32>
    %45 = arith.addf %0, %44 : vector<16x32xf32>
    %c2 = arith.constant 2 : index
    %c0_16 = arith.constant 0 : index
    %46 = vector.load %arg2[%c2, %c0_16] : memref<8x128xf32, #tpu.memory_space<vmem>>, vector<1x32xf32>
    %c3 = arith.constant 3 : index
    %c0_17 = arith.constant 0 : index
    %47 = vector.load %arg2[%c3, %c0_17] : memref<8x128xf32, #tpu.memory_space<vmem>>, vector<1x32xf32>
    %cst_18 = arith.constant dense<0.000000e+00> : vector<16xf32>
    %48 = vector.multi_reduction <add>, %45, %cst_18 [1] : vector<16x32xf32> to vector<16xf32>
    %49 = vector.shape_cast %48 : vector<16xf32> to vector<16x1xf32>
    %cst_19 = arith.constant 3.200000e+01 : f32
    %50 = vector.broadcast %cst_19 : f32 to vector<16x1xf32>
    %51 = arith.divf %49, %50 : vector<16x1xf32>
    %52 = vector.broadcast %51 : vector<16x1xf32> to vector<16x32xf32>
    %53 = arith.subf %45, %52 : vector<16x32xf32>
    %54 = arith.mulf %53, %53 : vector<16x32xf32>
    %cst_20 = arith.constant dense<0.000000e+00> : vector<16xf32>
    %55 = vector.multi_reduction <add>, %54, %cst_20 [1] : vector<16x32xf32> to vector<16xf32>
    %56 = vector.shape_cast %55 : vector<16xf32> to vector<16x1xf32>
    %cst_21 = arith.constant 3.200000e+01 : f32
    %57 = vector.broadcast %cst_21 : f32 to vector<16x1xf32>
    %58 = arith.divf %56, %57 : vector<16x1xf32>
    %59 = vector.broadcast %51 : vector<16x1xf32> to vector<16x32xf32>
    %60 = arith.subf %45, %59 : vector<16x32xf32>
    %cst_22 = arith.constant 9.99999974E-6 : f32
    %61 = vector.broadcast %cst_22 : f32 to vector<16x1xf32>
    %62 = arith.addf %58, %61 : vector<16x1xf32>
    %63 = math.rsqrt %62 : vector<16x1xf32>
    %64 = vector.broadcast %63 : vector<16x1xf32> to vector<16x32xf32>
    %65 = arith.mulf %60, %64 : vector<16x32xf32>
    %66 = vector.broadcast %46 : vector<1x32xf32> to vector<16x32xf32>
    %67 = arith.mulf %65, %66 : vector<16x32xf32>
    %68 = vector.broadcast %47 : vector<1x32xf32> to vector<16x32xf32>
    %69 = arith.addf %67, %68 : vector<16x32xf32>
    %70 = arith.truncf %69 : vector<16x32xf32> to vector<16x32xbf16>
    %c64 = arith.constant 64 : index
    %c0_23 = arith.constant 0 : index
    %71 = vector.load %arg1[%c64, %c0_23] : memref<160x128xbf16, #tpu.memory_space<vmem>>, vector<32x64xbf16>
    %cst_24 = arith.constant dense<0.000000e+00> : vector<16x64xf32>
    %72 = tpu.matmul %70, %71, %cst_24 {dimension_numbers = #tpu.dot_dimension_numbers<[1], [0], [0], [1], [0, 0, 1, 1], [], []>} : vector<16x32xbf16>, vector<32x64xbf16>, vector<16x64xf32> -> vector<16x64xf32>
    %c6 = arith.constant 6 : index
    %c0_25 = arith.constant 0 : index
    %73 = vector.load %arg2[%c6, %c0_25] : memref<8x128xf32, #tpu.memory_space<vmem>>, vector<1x64xf32>
    %74 = vector.broadcast %73 : vector<1x64xf32> to vector<16x64xf32>
    %75 = arith.addf %72, %74 : vector<16x64xf32>
    %cst_26 = arith.constant 0.000000e+00 : f32
    %76 = vector.broadcast %cst_26 : f32 to vector<16x64xf32>
    %77 = arith.maximumf %75, %76 : vector<16x64xf32>
    %78 = arith.truncf %77 : vector<16x64xf32> to vector<16x64xbf16>
    %c96 = arith.constant 96 : index
    %c0_27 = arith.constant 0 : index
    %79 = vector.load %arg1[%c96, %c0_27] : memref<160x128xbf16, #tpu.memory_space<vmem>>, vector<64x32xbf16>
    %cst_28 = arith.constant dense<0.000000e+00> : vector<16x32xf32>
    %80 = tpu.matmul %78, %79, %cst_28 {dimension_numbers = #tpu.dot_dimension_numbers<[1], [0], [0], [1], [0, 0, 1, 1], [], []>} : vector<16x64xbf16>, vector<64x32xbf16>, vector<16x32xf32> -> vector<16x32xf32>
    %c7 = arith.constant 7 : index
    %c0_29 = arith.constant 0 : index
    %81 = vector.load %arg2[%c7, %c0_29] : memref<8x128xf32, #tpu.memory_space<vmem>>, vector<1x32xf32>
    %82 = vector.broadcast %81 : vector<1x32xf32> to vector<16x32xf32>
    %83 = arith.addf %80, %82 : vector<16x32xf32>
    %84 = arith.addf %69, %83 : vector<16x32xf32>
    %c4 = arith.constant 4 : index
    %c0_30 = arith.constant 0 : index
    %85 = vector.load %arg2[%c4, %c0_30] : memref<8x128xf32, #tpu.memory_space<vmem>>, vector<1x32xf32>
    %c5 = arith.constant 5 : index
    %c0_31 = arith.constant 0 : index
    %86 = vector.load %arg2[%c5, %c0_31] : memref<8x128xf32, #tpu.memory_space<vmem>>, vector<1x32xf32>
    %cst_32 = arith.constant dense<0.000000e+00> : vector<16xf32>
    %87 = vector.multi_reduction <add>, %84, %cst_32 [1] : vector<16x32xf32> to vector<16xf32>
    %88 = vector.shape_cast %87 : vector<16xf32> to vector<16x1xf32>
    %cst_33 = arith.constant 3.200000e+01 : f32
    %89 = vector.broadcast %cst_33 : f32 to vector<16x1xf32>
    %90 = arith.divf %88, %89 : vector<16x1xf32>
    %91 = vector.broadcast %90 : vector<16x1xf32> to vector<16x32xf32>
    %92 = arith.subf %84, %91 : vector<16x32xf32>
    %93 = arith.mulf %92, %92 : vector<16x32xf32>
    %cst_34 = arith.constant dense<0.000000e+00> : vector<16xf32>
    %94 = vector.multi_reduction <add>, %93, %cst_34 [1] : vector<16x32xf32> to vector<16xf32>
    %95 = vector.shape_cast %94 : vector<16xf32> to vector<16x1xf32>
    %cst_35 = arith.constant 3.200000e+01 : f32
    %96 = vector.broadcast %cst_35 : f32 to vector<16x1xf32>
    %97 = arith.divf %95, %96 : vector<16x1xf32>
    %98 = vector.broadcast %90 : vector<16x1xf32> to vector<16x32xf32>
    %99 = arith.subf %84, %98 : vector<16x32xf32>
    %cst_36 = arith.constant 9.99999974E-6 : f32
    %100 = vector.broadcast %cst_36 : f32 to vector<16x1xf32>
    %101 = arith.addf %97, %100 : vector<16x1xf32>
    %102 = math.rsqrt %101 : vector<16x1xf32>
    %103 = vector.broadcast %102 : vector<16x1xf32> to vector<16x32xf32>
    %104 = arith.mulf %99, %103 : vector<16x32xf32>
    %105 = vector.broadcast %85 : vector<1x32xf32> to vector<16x32xf32>
    %106 = arith.mulf %104, %105 : vector<16x32xf32>
    %107 = vector.broadcast %86 : vector<1x32xf32> to vector<16x32xf32>
    %108 = arith.addf %106, %107 : vector<16x32xf32>
    %c0_37 = arith.constant 0 : index
    %c0_38 = arith.constant 0 : index
    %109 = vector.load %arg4[%c0_37, %c0_38] : memref<16x32xf32, #tpu.memory_space<vmem>>, vector<16x32xf32>
    tpu.vector_store %arg4[%c0_37, %c0_38], %108 {strides = array<i32>} : memref<16x32xf32, #tpu.memory_space<vmem>>, vector<16x32xf32>,
    return
  }
}

</mosaic_0001>

<bundles_post_ra>
// kernel: self_attention_forward.1
= control target key start
LH: loop header
LB: loop body
LE: loop exit
PB: predicated region body
PF: predicated region fallthrough
CT: control target
= control target key end

     0   :  { %9 = vsyncpa [#allocation3], 0  ;;  %s1250_s0 = inlined_call_operand.hbm [shape: f32[16,32], index: 0, kind: input, shape index: {}]   ;;  %s1251_s1 = inlined_call_operand.hbm [shape: bf16[160,128], index: 1, kind: input, shape index: {}]   ;;  %s1252_s2 = inlined_call_operand.hbm [shape: f32[8,128], index: 2, kind: input, shape index: {}]   ;;  %s1253_s3 = inlined_call_operand.hbm [shape: f32[64,128], index: 3, kind: input, shape index: {}]   ;;  %s1254_s4 = inlined_call_operand.hbm [shape: f32[16,32], index: 4, kind: output, shape index: {}]  }
   0x1   :  { %10 = vsyncpa [#allocation6], 0 }
   0x2   :  { %11 = vsyncpa [#allocation9], 0 }
   0x3   :  { %12 = vsyncpa [#allocation4], 0  ;;  %s1068_s15 = smov [#allocation5]  }
   0x4   :  { %s30_s16 = sshll.u32 %s1068_s15, 4  ;;  %s31_s16 = int_to_ptr.vmem [resolvable:$true] %s30_s16 }
   0x5   :  { %s968_s17 = scalar_lea.vmem %s31_s16, 1280  ;;  %p973_p1 = scmp.lt.s32.totalorder %s31_s16, %s31_s16 }
   0x6   :  { %p969_p0 = scmp.ne.s32.totalorder %s31_s16, %s968_s17  ;;  %p974_p2 = scmp.lt.s32.totalorder %s968_s17, %s968_s17 }
   0x8   :  { %p975_p3 = por %p974_p2, %p973_p1 }
   0xa   :  { %p976_p4 = pnand %p975_p3, %p969_p0 }
   0xc   :  { %979 = shalt.err (!%p976_p4)
}
   0xd   :  { %s1069_s18 = smov 64   ;;  %s1070_s19 = smov 4  }
   0xe   :  { %36 = dma.hbm_to_vmem [thread:$0]  %s1251_s1, 1280, %s31_s16, [#allocation6], %s1069_s18, %s1069_s18, %s1070_s19  }
   0xf   :  { %s1071_s22 = smov [#allocation2]  }
  0x10   :  { %s18_s23 = sshll.u32 %s1071_s22, 4  ;;  %s19_s23 = int_to_ptr.vmem [resolvable:$true] %s18_s23 }
  0x11   :  { %s988_s24 = scalar_lea.vmem %s19_s23, 256  ;;  %p993_p6 = scmp.lt.s32.totalorder %s19_s23, %s19_s23 }
  0x12   :  { %p989_p5 = scmp.ne.s32.totalorder %s19_s23, %s988_s24  ;;  %p994_p7 = scmp.lt.s32.totalorder %s988_s24, %s988_s24 }
  0x14   :  { %p995_p8 = por %p994_p7, %p993_p6 }
  0x16   :  { %p996_p9 = pnand %p995_p8, %p989_p5 }
  0x18   :  { %999 = shalt.err (!%p996_p9)
}
  0x19   :  { %s1072_s25 = smov 128   ;;  %s1073_s26 = smov 8  }
  0x1a   :  { %24 = dma.hbm_to_vmem [thread:$0]  %s1250_s0, 256, %s19_s23, [#allocation3], %s1072_s25, %s1072_s25, %s1073_s26  }
  0x1b   :  { %s1074_s1 = smov [#allocation7]   ;;  %s1075_s30 = smov [#allocation8]  }
  0x1c   :  { %s43_s29 = sshll.u32 %s1074_s1, 4  ;;  %s52_s5 = sshll.u32 %s1075_s30, 4  ;;  %s44_s29 = int_to_ptr.vmem [resolvable:$true] %s43_s29  ;;  %s53_s5 = int_to_ptr.vmem [resolvable:$true] %s52_s5 }
  0x1d   :  { %s1008_s6 = scalar_lea.vmem %s44_s29, 128  ;;  %p1013_p11 = scmp.lt.s32.totalorder %s44_s29, %s44_s29 }
  0x1e   :  { %p1009_p10 = scmp.ne.s32.totalorder %s44_s29, %s1008_s6  ;;  %p1014_p12 = scmp.lt.s32.totalorder %s1008_s6, %s1008_s6 }
  0x20   :  { %p1015_p13 = por %p1014_p12, %p1013_p11 }
  0x22   :  { %p1016_p0 = pnand %p1015_p13, %p1009_p10 }
  0x24   :  { %1019 = shalt.err (!%p1016_p0)
}
  0x25   :  { %46 = dma.hbm_to_vmem [thread:$0]  %s1252_s2, 128, %s44_s29, [#allocation6]  }
  0x26   :  { %s1028_s9 = scalar_lea.vmem %s53_s5, 1024  ;;  %p1033_p2 = scmp.lt.s32.totalorder %s53_s5, %s53_s5 }
  0x27   :  { %p1029_p1 = scmp.ne.s32.totalorder %s53_s5, %s1028_s9  ;;  %p1034_p3 = scmp.lt.s32.totalorder %s1028_s9, %s1028_s9 }
  0x29   :  { %p1035_p4 = por %p1034_p3, %p1033_p2 }
  0x2b   :  { %p1036_p5 = pnand %p1035_p4, %p1029_p1 }
  0x2d   :  { %1039 = shalt.err (!%p1036_p5)
}
  0x2e   :  { %58 = dma.hbm_to_vmem [thread:$0]  %s1253_s3, 1024, %s53_s5, [#allocation9], %s1072_s25, %s1072_s25, %s1073_s26  }
  0x2f   :  { %1060 = dma.done.wait [#allocation3], 256  }
  0x30   :  { %1061 = vsyncadd [#allocation3], 4294967040 }
  0x31   :  { %1062 = dma.done.wait [#allocation6], 1408  }
  0x32   :  { %1063 = vsyncadd [#allocation6], 4294965888 }
  0x33   :  { %1064 = dma.done.wait [#allocation9], 1024  }
  0x34   :  { %1065 = vsyncadd [#allocation9], 4294966272  ;;  %v1076_v0 = vmov 0.0   ;;  %vm1077_vm0 = vmmov 0   ;;  %v910_v1 = vld [vmem:[#allocation5 + $0x8] sm:$0xff]   ;;  %v911_v2 = vld [vmem:[#allocation5] sm:$0xff]  }
  0x35   :  { %841 = vmatprep.subr.bf16.mxu0 %v1076_v0  ;;  %845 = vmatprep.mubr.msk.bf16.mxu0 %vm1077_vm0, %v1076_v0  ;;  %v1128_v3 = vld [vmem:[#allocation2] sm:$0xff]  ;;  %v1130_v4 = vld [vmem:[#allocation2 + $0x8] sm:$0xff]  ;;  %vm104_vm1 = vcmask 261120   ;;  %v1136_v6 = vld [vmem:[#allocation8 + $0x8] sm:$0xff]  ;;  %s1078_s2 = smov 96   ;;  %vm277_vm2 = vcmask 130048  }
  0x36   :  { %842 = vmatpush3.bf16.msra.mxu0 %v910_v1  ;;  %v82_v5 = vpack.c.bf16 %v1130_v4, %v1128_v3  ;;  %175 = vrot.lane.b32.xlu1 %v1136_v6, %s1078_s2  ;;  %v1140_v7 = vld [vmem:[#allocation8 + $0x10] sm:$0xff]  ;;  %v1144_v8 = vld [vmem:[#allocation8 + $0x20] sm:$0xff]  ;;  %v787_v10 = vld [vmem:[#allocation7] ss:$0 sm:$0xff]  ;;  %vm679_vm3 = vcmask 523264   ;;  %s1079_s3 = smov [#allocation10]  }
  0x37   :  { %843 = vmatprep.subr.bf16.mxu0 %v1076_v0  ;;  %v1148_v9 = vld [vmem:[#allocation8 + $0x30] sm:$0xff]  ;;  %v1152_v14 = vld [vmem:[#allocation8] sm:$0xff]  ;;  %v1154_v16 = vld [vmem:[#allocation8 + $0x18] sm:$0xff]  ;;  %s773_s11 = sshll.u32 %s1079_s3, 4  ;;  %s774_s11 = int_to_ptr.vmem [resolvable:$true] %s773_s11 }
  0x38   :  { %v1156_v17 = vld [vmem:[#allocation8 + $0x28] sm:$0xff]  ;;  %v1158_v19 = vld [vmem:[#allocation8 + $0x38] sm:$0xff]  ;;  %s1040_s12 = scalar_lea.vmem %s774_s11, 256  ;;  %p1045_p7 = scmp.lt.s32.totalorder %s774_s11, %s774_s11 }
  0x39   :  { %p1041_p6 = scmp.ne.s32.totalorder %s774_s11, %s1040_s12  ;;  %p1046_p8 = scmp.lt.s32.totalorder %s1040_s12, %s1040_s12 }
  0x3a   :  { %844 = vmatpush3.bf16.msra.mxu0 %v911_v2  ;;  %177 = vrot.lane.b32.xlu1 %v1140_v7, %s1078_s2 }
  0x3b   :  { %p1047_p9 = por %p1046_p8, %p1045_p7 }
  0x3d   :  { %846 = vmatmul.mubr.msk.bf16.vlgmr.msra.gmra.mxu0 %vm104_vm1, %v82_v5  ;;  %p1048_p10 = pnand %p1047_p9, %p1041_p6 }
  0x3e   :  { %181 = vrot.lane.b32.xlu1 %v1144_v8, %s1078_s2 }
  0x42   :  { %185 = vrot.lane.b32.xlu1 %v1148_v9, %s1078_s2 }
  0xa8   :  { %v176_v36 = vpop.permute.xlu1 %175 }
  0xac   :  { %v178_v39 = vpop.permute.xlu1 %177 }
  0xb0   :  { %v182_v47 = vpop.permute.xlu1 %181 }
  0xb4   :  { %v186_v56 = vpop.permute.xlu1 %185 }
  0xfd   :  { %v142_v11 = vpop.f32.mrf.mxu0 }
  0xfe   :  { %v143_v12 = vadd.f32 %v787_v10, %v142_v11 }
  0xff   :  { %v847_v13 = vpop.f32.mrf.mxu0 }
 0x100   :  { %v149_v21 = vmul.f32 %v143_v12, %v1152_v14  ;;  %v151_v22 = vmul.f32 %v143_v12, %v1140_v7  ;;  %v153_v23 = vmul.f32 %v143_v12, %v1144_v8  ;;  %v155_v28 = vmul.f32 %v143_v12, %v1148_v9 }
 0x101   :  { %v145_v15 = vpop.f32.mrf.mxu0 }
 0x102   :  { %v146_v18 = vadd.f32 %v787_v10, %v145_v15 }
 0x103   :  { %v848_v20 = vpop.f32.mrf.mxu0 }
 0x104   :  { %v1163_v24 = vpack.c.bf16 %v146_v18, %v143_v12  ;;  %v150_v25 = vmul.f32 %v146_v18, %v1136_v6  ;;  %v152_v26 = vmul.f32 %v146_v18, %v1154_v16  ;;  %v154_v27 = vmul.f32 %v146_v18, %v1156_v17 }
 0x105   :  { %v156_v29 = vmul.f32 %v146_v18, %v1158_v19 }
 0x106   :  { %163 = vrot.lane.b32.xlu0 %v1163_v24, %s1078_s2  ;;  %v157_v30 = vpack.c.bf16 %v150_v25, %v149_v21  ;;  %v158_v31 = vpack.c.bf16 %v152_v26, %v151_v22  ;;  %v159_v32 = vpack.c.bf16 %v154_v27, %v153_v23 }
 0x107   :  { %v160_v33 = vpack.c.bf16 %v156_v29, %v155_v28 }
 0x108   :  { %851 = vmatprep.mubr.msk.bf16.mxu1 %vm104_vm1, %v157_v30 }
 0x10a   :  { %173 = vrot.lane.b32.xlu0 %v1152_v14, %s1078_s2 }
 0x10e   :  { %179 = vrot.lane.b32.xlu0 %v1154_v16, %s1078_s2 }
 0x112   :  { %183 = vrot.lane.b32.xlu0 %v1156_v17, %s1078_s2 }
 0x116   :  { %187 = vrot.lane.b32.xlu0 %v1158_v19, %s1078_s2 }
 0x178   :  { %v164_v34 = vpop.permute.xlu0 %163 }
 0x179   :  { %897 = vmatprep.subr.msk.bf16.mxu1 %vm104_vm1, %v164_v34  ;;  %v210_v35 = vsel %vm104_vm1, %v164_v34, 0 }
 0x17a   :  { %850 = vmatpush3.bf16.xpose.msra.mxu1 %v210_v35 }
 0x17b   :  { %869 = vmatprep.subr.bf16.mxu1 %v1076_v0 }
 0x17c   :  { %v174_v37 = vpop.permute.xlu0 %173 }
 0x180   :  { %v180_v41 = vpop.permute.xlu0 %179 }
 0x181   :  { %852 = vmatmul.mubr.msk.bf16.vlgmr.msra.gmra.mxu1 %vm104_vm1, %v158_v31 }
 0x182   :  { %855 = vmatprep.mubr.msk.bf16.mxu1 %vm104_vm1, %v159_v32 }
 0x184   :  { %v184_v49 = vpop.permute.xlu0 %183 }
 0x188   :  { %v188_v59 = vpop.permute.xlu0 %187 }
 0x189   :  { %856 = vmatmul.mubr.msk.bf16.gmra.mxu1 %vm104_vm1, %v160_v33 }
 0x18a   :  { %873 = vmatprep.mubr.msk.bf16.mxu1 %vm1077_vm0, %v1076_v0 }
 0x241   :  { %v853_v38 = vpop.f32.mrf.mxu1 }
 0x242   :  { %v255_v51 = vadd.f32 %v853_v38, %v178_v39 }
 0x243   :  { %v246_v40 = vpop.f32.mrf.mxu1 }
 0x244   :  { %v247_v42 = vadd.f32 %v246_v40, %v174_v37  ;;  %v284_v58 = vsel %vm277_vm2, %v255_v51, -inf }
 0x245   :  { %v854_v43 = vpop.f32.mrf.mxu1 }
 0x246   :  { %v258_v44 = vadd.f32 %v854_v43, %v180_v41  ;;  %v278_v45 = vsel %vm277_vm2, %v247_v42, -inf }
 0x247   :  { %v249_v46 = vpop.f32.mrf.mxu1  ;;  %279 = vmax.xlane.f32.xlu1 %v278_v45 }
 0x248   :  { %v250_v48 = vadd.f32 %v249_v46, %v176_v36  ;;  %v287_v53 = vsel %vm277_vm2, %v258_v44, -inf }
 0x249   :  { %v857_v50 = vpop.f32.mrf.mxu1 }
 0x24a   :  { %v281_v52 = vsel %vm277_vm2, %v250_v48, -inf  ;;  %v271_v62 = vadd.f32 %v857_v50, %v186_v56 }
 0x24b   :  { %v262_v54 = vpop.f32.mrf.mxu1  ;;  %282 = vmax.xlane.f32.xlu0 %v281_v52  ;;  %288 = vmax.xlane.f32.xlu1 %v287_v53 }
 0x24c   :  { %v263_v57 = vadd.f32 %v262_v54, %v182_v47  ;;  %v296_v5 = vsel %vm277_vm2, %v271_v62, -inf }
 0x24d   :  { %v858_v55 = vpop.f32.mrf.mxu1 }
 0x24e   :  { %v274_v63 = vadd.f32 %v858_v55, %v188_v59  ;;  %v290_v1 = vsel %vm277_vm2, %v263_v57, -inf }
 0x24f   :  { %v265_v60 = vpop.f32.mrf.mxu1  ;;  %285 = vmax.xlane.f32.xlu0 %v284_v58 }
 0x250   :  { %v266_v61 = vadd.f32 %v265_v60, %v184_v49  ;;  %v299_v10 = vsel %vm277_vm2, %v274_v63, -inf }
 0x252   :  { %v293_v2 = vsel %vm277_vm2, %v266_v61, -inf }
 0x253   :  { %291 = vmax.xlane.f32.xlu0 %v290_v1  ;;  %294 = vmax.xlane.f32.xlu1 %v293_v2 }
 0x257   :  { %297 = vmax.xlane.f32.xlu0 %v296_v5  ;;  %300 = vmax.xlane.f32.xlu1 %v299_v10 }
 0x2d0   :  { %v280_v11 = vpop.xlane.xlu1 %279 }
 0x2d1   :  { %v302_v20 = vsub.f32 %v247_v42, %v280_v11 }
 0x2d3   :  { %v310_v26 = vmul.f32 1.442695, %v302_v20 }
 0x2d4   :  { %v283_v12 = vpop.xlane.xlu0 %282  ;;  %v289_v13 = vpop.xlane.xlu1 %288 }
 0x2d5   :  { %v303_v15 = vsub.f32 %v250_v48, %v283_v12  ;;  %v305_v18 = vsub.f32 %v258_v44, %v289_v13 }
 0x2d7   :  { %v312_v21 = vmul.f32 1.442695, %v303_v15  ;;  %v316_v22 = vmul.f32 1.442695, %v305_v18 }
 0x2d8   :  { %v286_v23 = vpop.xlane.xlu0 %285 }
 0x2d9   :  { %920 = vpow2.f32 %v312_v21  ;;  %v304_v25 = vsub.f32 %v255_v51, %v286_v23 }
 0x2da   :  { %922 = vpow2.f32 %v316_v22 }
 0x2db   :  { %v314_v27 = vmul.f32 1.442695, %v304_v25 }
 0x2dc   :  { %v292_v28 = vpop.xlane.xlu0 %291  ;;  %v295_v29 = vpop.xlane.xlu1 %294 }
 0x2dd   :  { %924 = vpow2.f32 %v314_v27  ;;  %v307_v30 = vsub.f32 %v266_v61, %v295_v29  ;;  %v306_v31 = vsub.f32 %v263_v57, %v292_v28 }
 0x2de   :  { %926 = vpow2.f32 %v310_v26 }
 0x2df   :  { %v320_v32 = vmul.f32 1.442695, %v307_v30  ;;  %v318_v37 = vmul.f32 1.442695, %v306_v31 }
 0x2e0   :  { %v298_v33 = vpop.xlane.xlu0 %297  ;;  %v301_v34 = vpop.xlane.xlu1 %300 }
 0x2e1   :  { %v308_v35 = vsub.f32 %v271_v62, %v298_v33  ;;  %v309_v36 = vsub.f32 %v274_v63, %v301_v34  ;;  %928 = vpow2.f32 %v320_v32  ;;  %v912_v32 = vld [vmem:[#allocation5 + $0x18] sm:$0xff]   ;;  %v913_v33 = vld [vmem:[#allocation5 + $0x10] sm:$0xff]  }
 0x2e2   :  { %870 = vmatpush3.bf16.msra.mxu1 %v912_v32 }
 0x2e3   :  { %v322_v38 = vmul.f32 1.442695, %v308_v35  ;;  %v324_v39 = vmul.f32 1.442695, %v309_v36  ;;  %871 = vmatprep.subr.bf16.mxu1 %v1076_v0 }
 0x2e5   :  { %930 = vpow2.f32 %v322_v38 }
 0x2e6   :  { %v921_v40 = vpop.eup %920  ;;  %932 = vpow2.f32 %v324_v39  ;;  %872 = vmatpush3.bf16.msra.mxu1 %v913_v33 }
 0x2e7   :  { %934 = vpow2.f32 %v318_v37  ;;  %v329_v41 = vsel %vm277_vm2, %v921_v40, 0.0  ;;  %v923_v42 = vpop.eup %922  ;;  %885 = vmatprep.subr.bf16.mxu1 %v1076_v0 }
 0x2e8   :  { %330 = vadd.xlane.f32.xlu1 %v329_v41  ;;  %v335_v45 = vsel %vm277_vm2, %v923_v42, 0.0 }
 0x2ea   :  { %v925_v43 = vpop.eup %924 }
 0x2eb   :  { %v332_v44 = vsel %vm277_vm2, %v925_v43, 0.0  ;;  %v927_v46 = vpop.eup %926 }
 0x2ec   :  { %333 = vadd.xlane.f32.xlu0 %v332_v44  ;;  %336 = vadd.xlane.f32.xlu1 %v335_v45  ;;  %v326_v48 = vsel %vm277_vm2, %v927_v46, 0.0 }
 0x2ee   :  { %v929_v47 = vpop.eup %928 }
 0x2ef   :  { %v341_v49 = vsel %vm277_vm2, %v929_v47, 0.0 }
 0x2f0   :  { %327 = vadd.xlane.f32.xlu0 %v326_v48  ;;  %342 = vadd.xlane.f32.xlu1 %v341_v49 }
 0x2f2   :  { %v931_v50 = vpop.eup %930 }
 0x2f3   :  { %v933_v51 = vpop.eup %932  ;;  %v344_v52 = vsel %vm277_vm2, %v931_v50, 0.0 }
 0x2f4   :  { %v935_v53 = vpop.eup %934  ;;  %345 = vadd.xlane.f32.xlu0 %v344_v52  ;;  %v347_v54 = vsel %vm277_vm2, %v933_v51, 0.0 }
 0x2f5   :  { %348 = vadd.xlane.f32.xlu1 %v347_v54  ;;  %v338_v55 = vsel %vm277_vm2, %v935_v53, 0.0 }
 0x2f8   :  { %339 = vadd.xlane.f32.xlu0 %v338_v55 }
 0x30e   :  { %370 = vrot.lane.b32.xlu0 %v1163_v24, %s1069_s18 }
 0x371   :  { %v331_v56 = vpop.xlane.xlu1 %330 }
 0x375   :  { %v334_v57 = vpop.xlane.xlu0 %333  ;;  %v337_v58 = vpop.xlane.xlu1 %336 }
 0x376   :  { %936 = vrcp.f32 %v334_v57 }
 0x377   :  { %938 = vrcp.f32 %v337_v58 }
 0x378   :  { %940 = vrcp.f32 %v331_v56 }
 0x379   :  { %v328_v59 = vpop.xlane.xlu0 %327  ;;  %v343_v60 = vpop.xlane.xlu1 %342 }
 0x37a   :  { %942 = vrcp.f32 %v328_v59 }
 0x37d   :  { %v346_v61 = vpop.xlane.xlu0 %345 }
 0x37e   :  { %944 = vrcp.f32 %v346_v61  ;;  %v349_v62 = vpop.xlane.xlu1 %348 }
 0x37f   :  { %946 = vrcp.f32 %v349_v62 }
 0x380   :  { %948 = vrcp.f32 %v343_v60 }
 0x381   :  { %v340_v63 = vpop.xlane.xlu0 %339 }
 0x382   :  { %950 = vrcp.f32 %v340_v63 }
 0x383   :  { %v937_v1 = vpop.eup %936 }
 0x384   :  { %v939_v2 = vpop.eup %938  ;;  %v360_v11 = vmul.f32 %v937_v1, %v925_v43 }
 0x385   :  { %v941_v5 = vpop.eup %940  ;;  %v371_v24 = vpop.permute.xlu0 %370  ;;  %v361_v12 = vmul.f32 %v939_v2, %v923_v42 }
 0x386   :  { %859 = vmatprep.subr.bf16.mxu0 %v371_v24  ;;  %v359_v15 = vmul.f32 %v941_v5, %v921_v40 }
 0x387   :  { %v943_v10 = vpop.eup %942  ;;  %860 = vmatpush3.bf16.msra.mxu0 %v371_v24  ;;  %v367_v21 = vpack.c.bf16 %v361_v12, %v360_v11  ;;  %v914_v11 = vld [vmem:[#allocation5 + $0x28] sm:$0xff]  }
 0x388   :  { %v358_v13 = vmul.f32 %v943_v10, %v927_v46  ;;  %877 = vmatprep.subr.bf16.mxu0 %v1076_v0  ;;  %v916_v12 = vld [vmem:[#allocation5 + $0x48] sm:$0xff]  }
 0x38a   :  { %v366_v18 = vpack.c.bf16 %v359_v15, %v358_v13 }
 0x38b   :  { %v945_v20 = vpop.eup %944 }
 0x38c   :  { %v947_v22 = vpop.eup %946  ;;  %861 = vmatprep.mubr.msk.bf16.mxu0 %vm277_vm2, %v366_v18  ;;  %v364_v26 = vmul.f32 %v945_v20, %v931_v50 }
 0x38d   :  { %v949_v23 = vpop.eup %948  ;;  %862 = vmatmul.mubr.msk.bf16.vlgmr.msra.gmra.mxu0 %vm277_vm2, %v367_v21  ;;  %v365_v27 = vmul.f32 %v947_v22, %v933_v51 }
 0x38e   :  { %v363_v29 = vmul.f32 %v949_v23, %v929_v47  ;;  %878 = vmatpush3.bf16.msra.mxu0 %v914_v11 }
 0x38f   :  { %v951_v25 = vpop.eup %950  ;;  %v369_v31 = vpack.c.bf16 %v365_v27, %v364_v26  ;;  %879 = vmatprep.subr.bf16.mxu0 %v1076_v0  ;;  %v803_v26 = vld [vmem:[#allocation7 + $0x2] ss:$0 sm:$0xff] }
 0x390   :  { %v362_v28 = vmul.f32 %v951_v25, %v935_v53 }
 0x392   :  { %v368_v30 = vpack.c.bf16 %v363_v29, %v362_v28 }
 0x394   :  { %865 = vmatprep.mubr.msk.bf16.mxu0 %vm277_vm2, %v368_v30  ;;  %v804_v30 = vld [vmem:[#allocation7 + $0x3] ss:$0 sm:$0xff] }
 0x395   :  { %866 = vmatmul.mubr.msk.bf16.gmra.mxu0 %vm277_vm2, %v369_v31 }
 0x396   :  { %881 = vmatprep.mubr.msk.bf16.mxu0 %vm1077_vm0, %v1076_v0 }
 0x44d   :  { %v863_v34 = vpop.f32.mrf.mxu0 }
 0x44e   :  { %v452_v41 = vmul.f32 %v863_v34, %v1140_v7 }
 0x44f   :  { %v419_v35 = vpop.f32.mrf.mxu0 }
 0x450   :  { %v450_v39 = vmul.f32 %v419_v35, %v1152_v14  ;;  %v917_v35 = vld [vmem:[#allocation5 + $0x40] sm:$0xff]  }
 0x451   :  { %v864_v36 = vpop.f32.mrf.mxu0 }
 0x452   :  { %v458_v45 = vadd.f32 %v452_v41, %v450_v39  ;;  %v453_v46 = vmul.f32 %v864_v36, %v1154_v16  ;;  %v918_v36 = vld [vmem:[#allocation5 + $0x38] sm:$0xff]  }
 0x453   :  { %v422_v37 = vpop.f32.mrf.mxu0 }
 0x454   :  { %v451_v42 = vmul.f32 %v422_v37, %v1136_v6  ;;  %v799_v6 = vld [vmem:[#allocation7 + $0x1] ss:$0 sm:$0xff] }
 0x455   :  { %v867_v38 = vpop.f32.mrf.mxu0  ;;  %v919_v37 = vld [vmem:[#allocation5 + $0x30] sm:$0xff]  }
 0x456   :  { %v459_v48 = vadd.f32 %v453_v46, %v451_v42  ;;  %v456_v51 = vmul.f32 %v867_v38, %v1148_v9  ;;  %v805_v38 = vld [vmem:[#allocation7 + $0x6] ss:$0 sm:$0xff] }
 0x457   :  { %v435_v40 = vpop.f32.mrf.mxu0 }
 0x458   :  { %v454_v43 = vmul.f32 %v435_v40, %v1144_v8 }
 0x459   :  { %v868_v44 = vpop.f32.mrf.mxu0 }
 0x45a   :  { %v460_v49 = vadd.f32 %v458_v45, %v454_v43  ;;  %v457_v14 = vmul.f32 %v868_v44, %v1158_v19 }
 0x45b   :  { %v438_v47 = vpop.f32.mrf.mxu0 }
 0x45c   :  { %v455_v50 = vmul.f32 %v438_v47, %v1156_v17  ;;  %v462_v53 = vadd.f32 %v460_v49, %v456_v51 }
 0x45e   :  { %v461_v52 = vadd.f32 %v459_v48, %v455_v50  ;;  %v809_v48 = vld [vmem:[#allocation7 + $0x7] ss:$0 sm:$0xff] }
 0x460   :  { %v463_v7 = vadd.f32 %v461_v52, %v457_v14 }
 0x462   :  { %v464_v54 = vpack.c.bf16 %v463_v7, %v462_v53 }
 0x464   :  { %874 = vmatmul.mubr.msk.bf16.vlgmr.msra.gmra.mxu1 %vm104_vm1, %v464_v54 }
 0x465   :  { %893 = vmatprep.mubr.msk.bf16.mxu1 %vm1077_vm0, %v1076_v0  ;;  %886 = vmatpush3.bf16.msra.mxu1 %v916_v12 }
 0x466   :  { %887 = vmatprep.subr.bf16.mxu1 %v1076_v0 }
 0x469   :  { %888 = vmatpush3.bf16.msra.mxu1 %v917_v35 }
 0x46a   :  { %889 = vmatprep.subr.bf16.mxu1 %v1076_v0 }
 0x46d   :  { %890 = vmatpush3.bf16.msra.mxu1 %v918_v36 }
 0x46e   :  { %891 = vmatprep.subr.bf16.mxu1 %v1076_v0 }
 0x471   :  { %892 = vmatpush3.bf16.msra.mxu1 %v919_v37 }
 0x524   :  { %v523_v8 = vpop.f32.mrf.mxu1 }
 0x525   :  { %v524_v16 = vadd.f32 %v799_v6, %v523_v8 }
 0x526   :  { %v875_v55 = vpop.f32.mrf.mxu1 }
 0x527   :  { %v530_v56 = vadd.f32 %v524_v16, %v1128_v3 }
 0x528   :  { %v526_v17 = vpop.f32.mrf.mxu1 }
 0x529   :  { %v527_v57 = vadd.f32 %v799_v6, %v526_v17  ;;  %v534_v9 = vsel %vm104_vm1, %v530_v56, 0.0 }
 0x52a   :  { %535 = vadd.xlane.f32.xlu1 %v534_v9  ;;  %v876_v19 = vpop.f32.mrf.mxu1 }
 0x52b   :  { %v531_v58 = vadd.f32 %v527_v57, %v1130_v4  ;;  %v915_v4 = vld [vmem:[#allocation5 + $0x20] sm:$0xff]  }
 0x52c   :  { %880 = vmatpush3.bf16.msra.mxu0 %v915_v4 }
 0x52d   :  { %v537_v59 = vsel %vm104_vm1, %v531_v58, 0.0 }
 0x52e   :  { %538 = vadd.xlane.f32.xlu1 %v537_v59 }
 0x5b3   :  { %v536_v60 = vpop.xlane.xlu1 %535 }
 0x5b4   :  { %v541_v61 = vmul.f32 0.03125, %v536_v60 }
 0x5b6   :  { %v543_v62 = vsub.f32 %v530_v56, %v541_v61 }
 0x5b7   :  { %v539_v63 = vpop.xlane.xlu1 %538 }
 0x5b8   :  { %v542_v1 = vmul.f32 0.03125, %v539_v63  ;;  %v545_v2 = vmul.f32 %v543_v62, %v543_v62 }
 0x5ba   :  { %v544_v5 = vsub.f32 %v531_v58, %v542_v1  ;;  %v547_v3 = vsel %vm104_vm1, %v545_v2, 0.0 }
 0x5bb   :  { %548 = vadd.xlane.f32.xlu1 %v547_v3  ;;  %v815_v3 = vld [vmem:[#allocation7 + $0x4] ss:$0 sm:$0xff] }
 0x5bc   :  { %v546_v24 = vmul.f32 %v544_v5, %v544_v5 }
 0x5be   :  { %v550_v10 = vsel %vm104_vm1, %v546_v24, 0.0 }
 0x5bf   :  { %551 = vadd.xlane.f32.xlu1 %v550_v10  ;;  %v816_v10 = vld [vmem:[#allocation7 + $0x5] ss:$0 sm:$0xff] }
 0x644   :  { %v549_v13 = vpop.xlane.xlu1 %548 }
 0x645   :  { %v553_v15 = vmul.f32 0.03125, %v549_v13 }
 0x647   :  { %v555_v18 = vadd.f32 1e-05, %v553_v15 }
 0x648   :  { %v552_v20 = vpop.xlane.xlu1 %551 }
 0x649   :  { %952 = vrsqrt.f32 %v555_v18  ;;  %v554_v21 = vmul.f32 0.03125, %v552_v20 }
 0x64b   :  { %v556_v22 = vadd.f32 1e-05, %v554_v21 }
 0x64d   :  { %954 = vrsqrt.f32 %v556_v22 }
 0x656   :  { %v953_v23 = vpop.eup %952 }
 0x657   :  { %v559_v25 = vmul.f32 %v953_v23, %v543_v62 }
 0x659   :  { %v565_v28 = vmul.f32 %v803_v26, %v559_v25 }
 0x65a   :  { %v955_v27 = vpop.eup %954 }
 0x65b   :  { %v560_v29 = vmul.f32 %v955_v27, %v544_v5  ;;  %v571_v32 = vadd.f32 %v804_v30, %v565_v28 }
 0x65d   :  { %v566_v31 = vmul.f32 %v803_v26, %v560_v29 }
 0x65f   :  { %v572_v33 = vadd.f32 %v804_v30, %v566_v31 }
 0x661   :  { %v573_v34 = vpack.c.bf16 %v572_v33, %v571_v32 }
 0x663   :  { %882 = vmatmul.mubr.msk.bf16.vlgmr.msra.gmra.mxu0 %vm104_vm1, %v573_v34 }
 0x723   :  { %v632_v39 = vpop.f32.mrf.mxu0 }
 0x724   :  { %v633_v41 = vadd.f32 %v805_v38, %v632_v39 }
 0x725   :  { %v883_v40 = vpop.f32.mrf.mxu0 }
 0x726   :  { %v639_v45 = vmax.f32 %v633_v41, 0.0 }
 0x727   :  { %v635_v42 = vpop.f32.mrf.mxu0 }
 0x728   :  { %v636_v43 = vadd.f32 %v805_v38, %v635_v42 }
 0x729   :  { %v884_v44 = vpop.f32.mrf.mxu0 }
 0x72a   :  { %v640_v46 = vmax.f32 %v636_v43, 0.0 }
 0x72c   :  { %v641_v47 = vpack.c.bf16 %v640_v46, %v639_v45 }
 0x72e   :  { %894 = vmatmul.mubr.msk.bf16.vlgmr.msra.gmra.mxu1 %vm679_vm3, %v641_v47 }
 0x7ee   :  { %v717_v49 = vpop.f32.mrf.mxu1 }
 0x7ef   :  { %v718_v50 = vadd.f32 %v809_v48, %v717_v49 }
 0x7f0   :  { %v895_v51 = vpop.f32.mrf.mxu1 }
 0x7f1   :  { %v724_v14 = vadd.f32 %v718_v50, %v571_v32 }
 0x7f2   :  { %v720_v0 = vpop.f32.mrf.mxu1 }
 0x7f3   :  { %v721_v52 = vadd.f32 %v809_v48, %v720_v0  ;;  %v728_v53 = vsel %vm104_vm1, %v724_v14, 0.0 }
 0x7f4   :  { %729 = vadd.xlane.f32.xlu1 %v728_v53  ;;  %v896_v7 = vpop.f32.mrf.mxu1 }
 0x7f5   :  { %v725_v54 = vadd.f32 %v721_v52, %v572_v33 }
 0x7f7   :  { %v731_v6 = vsel %vm104_vm1, %v725_v54, 0.0 }
 0x7f8   :  { %732 = vadd.xlane.f32.xlu1 %v731_v6 }
 0x87d   :  { %v730_v8 = vpop.xlane.xlu1 %729 }
 0x87e   :  { %v734_v16 = vmul.f32 0.03125, %v730_v8 }
 0x880   :  { %v736_v55 = vsub.f32 %v724_v14, %v734_v16 }
 0x881   :  { %v733_v56 = vpop.xlane.xlu1 %732 }
 0x882   :  { %v735_v17 = vmul.f32 0.03125, %v733_v56  ;;  %v738_v57 = vmul.f32 %v736_v55, %v736_v55 }
 0x884   :  { %v737_v9 = vsub.f32 %v725_v54, %v735_v17  ;;  %v740_v19 = vsel %vm104_vm1, %v738_v57, 0.0 }
 0x885   :  { %741 = vadd.xlane.f32.xlu0 %v740_v19 }
 0x886   :  { %v739_v58 = vmul.f32 %v737_v9, %v737_v9 }
 0x888   :  { %v743_v59 = vsel %vm104_vm1, %v739_v58, 0.0 }
 0x889   :  { %744 = vadd.xlane.f32.xlu1 %v743_v59 }
 0x90e   :  { %v742_v60 = vpop.xlane.xlu0 %741 }
 0x90f   :  { %v746_v61 = vmul.f32 0.03125, %v742_v60 }
 0x911   :  { %v748_v62 = vadd.f32 1e-05, %v746_v61 }
 0x912   :  { %v745_v63 = vpop.xlane.xlu1 %744 }
 0x913   :  { %956 = vrsqrt.f32 %v748_v62  ;;  %v747_v1 = vmul.f32 0.03125, %v745_v63 }
 0x915   :  { %v749_v2 = vadd.f32 1e-05, %v747_v1 }
 0x917   :  { %958 = vrsqrt.f32 %v749_v2 }
 0x920   :  { %v957_v5 = vpop.eup %956 }
 0x921   :  { %v752_v24 = vmul.f32 %v957_v5, %v736_v55 }
 0x923   :  { %v758_v11 = vmul.f32 %v815_v3, %v752_v24 }
 0x924   :  { %v959_v4 = vpop.eup %958 }
 0x925   :  { %v753_v12 = vmul.f32 %v959_v4, %v737_v9  ;;  %v764_v13 = vadd.f32 %v816_v10, %v758_v11 }
 0x927   :  { %v759_v15 = vmul.f32 %v815_v3, %v753_v12  ;;  %766 = vst.msk [vmem:[#allocation10] sm:$0xff] %vm104_vm1, %v764_v13 }
 0x929   :  { %v765_v18 = vadd.f32 %v816_v10, %v759_v15 }
 0x92b   :  { %767 = vst.msk [vmem:[#allocation10 + $0x8] sm:$0xff] %vm104_vm1, %v765_v18 }
 0x92c   :  { %1051 = shalt.err (!%p1048_p10)
}
 0x92d   :  { %779 = dma.vmem_to_hbm [thread:$0]  %s774_s11, 256, %s1254_s4, [#allocation4], %s1072_s25, %s1072_s25, %s1073_s26  }
 0x92e   :  { %1066 = dma.done.wait [#allocation4], 256  }
 0x92f   :  { %1067 = vsyncadd [#allocation4], 4294967040 }
 0x930   :  { %783 = vsyncpa [#allocation3], 1 }
 0x931   :  { %784 = vsyncpa [#allocation6], 1 }
 0x932   :  { %785 = vsyncpa [#allocation9], 1 }
 0x933   :  { %786 = vsyncpa [#allocation4], 1 }

</bundles_post_ra>
